<compile_context>
chip_gen: v5e
topology: v5e:2x2
jax: 0.10.0
libtpu: 0.0.40
codegen_flags: <defaults>
</compile_context>

<pallas_src>
import functools

import jax
import jax.numpy as jnp
from jax import lax
from jax.experimental import pallas as pl
from jax.experimental.pallas import tpu as pltpu

SIZE = 32          # per-input feature size -> concat feature dim 4*SIZE = 128 (lane-dense)
BATCH = 256        # demo batch (small, but enough for 2 grid tiles)
TILE_B = 128       # rows per grid step in the demo
DROPOUT_P = 0.1
BN_EPS = 1e-5

# splitmix32 constants, expressed as signed int32 (Mosaic-friendly: int32 ops only).
_M1 = 0x7FEB352D                     # fits in int32
_M2 = -2073319797                    # == 0x846CA68B as signed int32
_GOLD = -1640531527                  # == 0x9E3779B9 as signed int32


def _srl(x, n):
    # logical (unsigned) right shift on int32 bit patterns
    return lax.shift_right_logical(x, jnp.int32(n))


def _splitmix32(x):
    x = (x ^ _srl(x, 16)) * jnp.int32(_M1)
    x = (x ^ _srl(x, 15)) * jnp.int32(_M2)
    return x ^ _srl(x, 16)


def _stats_kernel(prem_ref, hypo_ref, stats_ref, *, S):
    """Pass 1: accumulate per-feature sum (row 0) and sum-of-squares (row 1) over the batch."""
    @pl.when(pl.program_id(0) == 0)
    def _init():
        stats_ref[...] = jnp.zeros_like(stats_ref)

    p = prem_ref[...].astype(jnp.float32)
    h = hypo_ref[...].astype(jnp.float32)
    for k, x in enumerate((p, h, p - h, p * h)):
        sl = slice(k * S, (k + 1) * S)
        stats_ref[0:1, sl] += jnp.sum(x, axis=0, keepdims=True)
        stats_ref[1:2, sl] += jnp.sum(x * x, axis=0, keepdims=True)


def _apply_kernel(seed_ref, stats_ref, gamma_ref, beta_ref, prem_ref, hypo_ref, out_ref,
                  *, S, total_b, tile_b, dropout_p, eps):
    """Pass 2: fused BatchNorm (global batch stats) + affine + inverted dropout."""
    C = 4 * S
    inv_n = 1.0 / total_b
    inv_keep = 1.0 / (1.0 - dropout_p) if dropout_p > 0.0 else 1.0
    use_dropout = dropout_p > 0.0

    p = prem_ref[...].astype(jnp.float32)
    h = hypo_ref[...].astype(jnp.float32)

    if use_dropout:
        # integer threshold: drop iff hash < thresh  (hash uniform over full int32 range)
        thresh = jnp.int32(int(round(dropout_p * 4294967296.0)) - 2147483648)
        seed = seed_ref[0]
        row_g = (lax.broadcasted_iota(jnp.int32, (tile_b, S), 0)
                 + pl.program_id(0) * tile_b)                    # global row index
        col = lax.broadcasted_iota(jnp.int32, (tile_b, S), 1)
        base = row_g * C + col + seed * jnp.int32(_GOLD)         # unique counter per element

    for k, x in enumerate((p, h, p - h, p * h)):
        sl = slice(k * S, (k + 1) * S)
        # per-feature stats of the full batch (tiny (1,S) math, recomputed per tile)
        mean = stats_ref[0:1, sl] * inv_n
        var = jnp.maximum(stats_ref[1:2, sl] * inv_n - mean * mean, 0.0)   # biased variance
        g = gamma_ref[0:1, sl] * lax.rsqrt(var + eps)
        a = g * inv_keep                                   # dropout scale folded into affine
        b = (beta_ref[0:1, sl] - mean * g) * inv_keep
        y = x * a + b                                      # (tile_b, S)
        if use_dropout:
            bits = _splitmix32(base + k * S)
            y = jnp.where(bits >= thresh, y, 0.0)
        out_ref[:, sl] = y.astype(out_ref.dtype)


def merger(prem, hypo, gamma, beta, seed, *, dropout_p=DROPOUT_P, eps=BN_EPS,
           tile_b=None, out_dtype=jnp.float32):
    B, S = prem.shape
    C = 4 * S
    assert 0.0 <= dropout_p < 1.0
    if tile_b is None:
        tile_b = min(B, 512)
    assert B % tile_b == 0 and tile_b % 8 == 0, "batch tile must divide B and be a multiple of 8"
    nt = B // tile_b

    gamma = jnp.asarray(gamma, jnp.float32).reshape(1, C)
    beta = jnp.asarray(beta, jnp.float32).reshape(1, C)
    seed = jnp.asarray(seed, jnp.int32).reshape(1)

    # ---- pass 1: global per-feature sum / sum-of-squares (grid accumulator) ----
    stats = pl.pallas_call(
        functools.partial(_stats_kernel, S=S),
        out_shape=jax.ShapeDtypeStruct((2, C), jnp.float32),
        grid=(nt,),
        in_specs=[
            pl.BlockSpec((tile_b, S), lambda t: (t, 0)),
            pl.BlockSpec((tile_b, S), lambda t: (t, 0)),
        ],
        out_specs=pl.BlockSpec((2, C), lambda t: (0, 0)),
        compiler_params=pltpu.CompilerParams(dimension_semantics=("arbitrary",)),
    )(prem, hypo)

    # ---- pass 2: normalize + affine + dropout, lane-dense (tile_b, 4S) output tiles ----
    out = pl.pallas_call(
        functools.partial(_apply_kernel, S=S, total_b=B, tile_b=tile_b,
                          dropout_p=dropout_p, eps=eps),
        out_shape=jax.ShapeDtypeStruct((B, C), out_dtype),
        grid=(nt,),
        in_specs=[
            pl.BlockSpec(memory_space=pltpu.MemorySpace.SMEM),   # seed scalar
            pl.BlockSpec((2, C), lambda t: (0, 0)),              # batch stats
            pl.BlockSpec((1, C), lambda t: (0, 0)),              # gamma
            pl.BlockSpec((1, C), lambda t: (0, 0)),              # beta
            pl.BlockSpec((tile_b, S), lambda t: (t, 0)),         # prem tile
            pl.BlockSpec((tile_b, S), lambda t: (t, 0)),         # hypo tile
        ],
        out_specs=pl.BlockSpec((tile_b, C), lambda t: (t, 0)),
        compiler_params=pltpu.CompilerParams(dimension_semantics=("parallel",)),
    )(seed, stats, gamma, beta, prem, hypo)
    return out


if __name__ == "__main__":
    key = jax.random.PRNGKey(0)
    k1, k2 = jax.random.split(key)

    prem = jax.random.normal(k1, (BATCH, SIZE), dtype=jnp.float32)
    hypo = jax.random.normal(k2, (BATCH, SIZE), dtype=jnp.float32)

    # nn.BatchNorm1d default init: weight = 1, bias = 0.
    gamma = jnp.ones((4 * SIZE,), dtype=jnp.float32)
    beta = jnp.zeros((4 * SIZE,), dtype=jnp.float32)
    seed = jnp.array([42], dtype=jnp.int32)

    # Pure-JAX reference for the BatchNorm part (training mode: batch mean, biased var).
    x = jnp.concatenate([prem, hypo, prem - hypo, prem * hypo], axis=1)
    mean = jnp.mean(x, axis=0, keepdims=True)
    var = jnp.mean((x - mean) ** 2, axis=0, keepdims=True)
    ref_bn = (x - mean) * lax.rsqrt(var + BN_EPS) * gamma.reshape(1, -1) + beta.reshape(1, -1)

    # 1) dropout disabled -> must match BN reference.
    out_nodrop = merger(prem, hypo, gamma, beta, seed, dropout_p=0.0, tile_b=TILE_B)
    jax.block_until_ready(out_nodrop)
    assert out_nodrop.shape == (BATCH, 4 * SIZE)
    assert jnp.allclose(out_nodrop, ref_bn, atol=1e-4, rtol=1e-4)

    # 2) training-mode dropout: kept elements equal ref/(1-p); dropped fraction ~ p.
    out = merger(prem, hypo, gamma, beta, seed, dropout_p=DROPOUT_P, tile_b=TILE_B)
    jax.block_until_ready(out)
    assert out.shape == (BATCH, 4 * SIZE) and out.dtype == jnp.float32
    kept = out != 0.0
    drop_frac = float(1.0 - jnp.mean(kept.astype(jnp.float32)))
    assert 0.03 < drop_frac < 0.2
    assert jnp.allclose(jnp.where(kept, out, 0.0),
                        jnp.where(kept, ref_bn / (1.0 - DROPOUT_P), 0.0),
                        atol=1e-4, rtol=1e-4)

    print("KERNEL_OK")
</pallas_src>

<mosaic_0001>
module attributes {stable_mosaic.version = 11 : i64} {
  func.func @_stats_kernel(%arg0: i32, %arg1: memref<128x32xf32, #tpu.memory_space<vmem>>, %arg2: memref<128x32xf32, #tpu.memory_space<vmem>>, %arg3: memref<2x128xf32, #tpu.memory_space<vmem>>) attributes {dimension_semantics = [#tpu.dimension_semantics<arbitrary>], iteration_bounds = array<i64: 2>, scalar_prefetch = 0 : i64, scratch_operands = 0 : i64, tpu.core_type = #tpu.core_type<tc>, window_params = [{transform_indices = @transform_0, window_bounds = array<i64: 128, 32>}, {transform_indices = @transform_1, window_bounds = array<i64: 128, 32>}, {pipeline_mode = #tpu.pipeline_mode<synchronous>, transform_indices = @transform_2, window_bounds = array<i64: 2, 128>}]} {
    %c0_i32 = arith.constant 0 : i32
    %0 = arith.cmpi eq, %arg0, %c0_i32 : i32
    %1 = arith.extui %0 : i1 to i32
    %c0_i32_0 = arith.constant 0 : i32
    %2 = arith.cmpi ne, %1, %c0_i32_0 : i32
    scf.if %2 {
      %cst_39 = arith.constant 0.000000e+00 : f32
      %51 = vector.broadcast %cst_39 : f32 to vector<2x128xf32>
      %c0_40 = arith.constant 0 : index
      %c0_41 = arith.constant 0 : index
      %52 = vector.load %arg3[%c0_40, %c0_41] : memref<2x128xf32, #tpu.memory_space<vmem>>, vector<2x128xf32>
      tpu.vector_store %arg3[%c0_40, %c0_41], %51 {strides = array<i32>} : memref<2x128xf32, #tpu.memory_space<vmem>>, vector<2x128xf32>,
    } else {
    }
    %c0 = arith.constant 0 : index
    %c0_1 = arith.constant 0 : index
    %3 = vector.load %arg1[%c0, %c0_1] : memref<128x32xf32, #tpu.memory_space<vmem>>, vector<128x32xf32>
    %c0_2 = arith.constant 0 : index
    %c0_3 = arith.constant 0 : index
    %4 = vector.load %arg2[%c0_2, %c0_3] : memref<128x32xf32, #tpu.memory_space<vmem>>, vector<128x32xf32>
    %5 = arith.subf %3, %4 : vector<128x32xf32>
    %6 = arith.mulf %3, %4 : vector<128x32xf32>
    %c0_4 = arith.constant 0 : index
    %c0_5 = arith.constant 0 : index
    %7 = vector.load %arg3[%c0_4, %c0_5] : memref<2x128xf32, #tpu.memory_space<vmem>>, vector<1x32xf32>
    %cst = arith.constant dense<0.000000e+00> : vector<32xf32>
    %8 = vector.multi_reduction <add>, %3, %cst [0] : vector<128x32xf32> to vector<32xf32>
    %9 = vector.shape_cast %8 : vector<32xf32> to vector<1x32xf32>
    %10 = arith.addf %7, %9 : vector<1x32xf32>
    %c0_6 = arith.constant 0 : index
    %c0_7 = arith.constant 0 : index
    %11 = vector.load %arg3[%c0_6, %c0_7] : memref<2x128xf32, #tpu.memory_space<vmem>>, vector<1x32xf32>
    tpu.vector_store %arg3[%c0_6, %c0_7], %10 {strides = array<i32>} : memref<2x128xf32, #tpu.memory_space<vmem>>, vector<1x32xf32>,
    %c1 = arith.constant 1 : index
    %c0_8 = arith.constant 0 : index
    %12 = vector.load %arg3[%c1, %c0_8] : memref<2x128xf32, #tpu.memory_space<vmem>>, vector<1x32xf32>
    %13 = arith.mulf %3, %3 : vector<128x32xf32>
    %cst_9 = arith.constant dense<0.000000e+00> : vector<32xf32>
    %14 = vector.multi_reduction <add>, %13, %cst_9 [0] : vector<128x32xf32> to vector<32xf32>
    %15 = vector.shape_cast %14 : vector<32xf32> to vector<1x32xf32>
    %16 = arith.addf %12, %15 : vector<1x32xf32>
    %c1_10 = arith.constant 1 : index
    %c0_11 = arith.constant 0 : index
    %17 = vector.load %arg3[%c1_10, %c0_11] : memref<2x128xf32, #tpu.memory_space<vmem>>, vector<1x32xf32>
    tpu.vector_store %arg3[%c1_10, %c0_11], %16 {strides = array<i32>} : memref<2x128xf32, #tpu.memory_space<vmem>>, vector<1x32xf32>,
    %c0_12 = arith.constant 0 : index
    %c32 = arith.constant 32 : index
    %18 = vector.load %arg3[%c0_12, %c32] : memref<2x128xf32, #tpu.memory_space<vmem>>, vector<1x32xf32>
    %cst_13 = arith.constant dense<0.000000e+00> : vector<32xf32>
    %19 = vector.multi_reduction <add>, %4, %cst_13 [0] : vector<128x32xf32> to vector<32xf32>
    %20 = vector.shape_cast %19 : vector<32xf32> to vector<1x32xf32>
    %21 = arith.addf %18, %20 : vector<1x32xf32>
    %c0_14 = arith.constant 0 : index
    %c32_15 = arith.constant 32 : index
    %22 = vector.load %arg3[%c0_14, %c32_15] : memref<2x128xf32, #tpu.memory_space<vmem>>, vector<1x32xf32>
    tpu.vector_store %arg3[%c0_14, %c32_15], %21 {strides = array<i32>} : memref<2x128xf32, #tpu.memory_space<vmem>>, vector<1x32xf32>,
    %c1_16 = arith.constant 1 : index
    %c32_17 = arith.constant 32 : index
    %23 = vector.load %arg3[%c1_16, %c32_17] : memref<2x128xf32, #tpu.memory_space<vmem>>, vector<1x32xf32>
    %24 = arith.mulf %4, %4 : vector<128x32xf32>
    %cst_18 = arith.constant dense<0.000000e+00> : vector<32xf32>
    %25 = vector.multi_reduction <add>, %24, %cst_18 [0] : vector<128x32xf32> to vector<32xf32>
    %26 = vector.shape_cast %25 : vector<32xf32> to vector<1x32xf32>
    %27 = arith.addf %23, %26 : vector<1x32xf32>
    %c1_19 = arith.constant 1 : index
    %c32_20 = arith.constant 32 : index
    %28 = vector.load %arg3[%c1_19, %c32_20] : memref<2x128xf32, #tpu.memory_space<vmem>>, vector<1x32xf32>
    tpu.vector_store %arg3[%c1_19, %c32_20], %27 {strides = array<i32>} : memref<2x128xf32, #tpu.memory_space<vmem>>, vector<1x32xf32>,
    %c0_21 = arith.constant 0 : index
    %c64 = arith.constant 64 : index
    %29 = vector.load %arg3[%c0_21, %c64] : memref<2x128xf32, #tpu.memory_space<vmem>>, vector<1x32xf32>
    %cst_22 = arith.constant dense<0.000000e+00> : vector<32xf32>
    %30 = vector.multi_reduction <add>, %5, %cst_22 [0] : vector<128x32xf32> to vector<32xf32>
    %31 = vector.shape_cast %30 : vector<32xf32> to vector<1x32xf32>
    %32 = arith.addf %29, %31 : vector<1x32xf32>
    %c0_23 = arith.constant 0 : index
    %c64_24 = arith.constant 64 : index
    %33 = vector.load %arg3[%c0_23, %c64_24] : memref<2x128xf32, #tpu.memory_space<vmem>>, vector<1x32xf32>
    tpu.vector_store %arg3[%c0_23, %c64_24], %32 {strides = array<i32>} : memref<2x128xf32, #tpu.memory_space<vmem>>, vector<1x32xf32>,
    %c1_25 = arith.constant 1 : index
    %c64_26 = arith.constant 64 : index
    %34 = vector.load %arg3[%c1_25, %c64_26] : memref<2x128xf32, #tpu.memory_space<vmem>>, vector<1x32xf32>
    %35 = arith.mulf %5, %5 : vector<128x32xf32>
    %cst_27 = arith.constant dense<0.000000e+00> : vector<32xf32>
    %36 = vector.multi_reduction <add>, %35, %cst_27 [0] : vector<128x32xf32> to vector<32xf32>
    %37 = vector.shape_cast %36 : vector<32xf32> to vector<1x32xf32>
    %38 = arith.addf %34, %37 : vector<1x32xf32>
    %c1_28 = arith.constant 1 : index
    %c64_29 = arith.constant 64 : index
    %39 = vector.load %arg3[%c1_28, %c64_29] : memref<2x128xf32, #tpu.memory_space<vmem>>, vector<1x32xf32>
    tpu.vector_store %arg3[%c1_28, %c64_29], %38 {strides = array<i32>} : memref<2x128xf32, #tpu.memory_space<vmem>>, vector<1x32xf32>,
    %c0_30 = arith.constant 0 : index
    %c96 = arith.constant 96 : index
    %40 = vector.load %arg3[%c0_30, %c96] : memref<2x128xf32, #tpu.memory_space<vmem>>, vector<1x32xf32>
    %cst_31 = arith.constant dense<0.000000e+00> : vector<32xf32>
    %41 = vector.multi_reduction <add>, %6, %cst_31 [0] : vector<128x32xf32> to vector<32xf32>
    %42 = vector.shape_cast %41 : vector<32xf32> to vector<1x32xf32>
    %43 = arith.addf %40, %42 : vector<1x32xf32>
    %c0_32 = arith.constant 0 : index
    %c96_33 = arith.constant 96 : index
    %44 = vector.load %arg3[%c0_32, %c96_33] : memref<2x128xf32, #tpu.memory_space<vmem>>, vector<1x32xf32>
    tpu.vector_store %arg3[%c0_32, %c96_33], %43 {strides = array<i32>} : memref<2x128xf32, #tpu.memory_space<vmem>>, vector<1x32xf32>,
    %c1_34 = arith.constant 1 : index
    %c96_35 = arith.constant 96 : index
    %45 = vector.load %arg3[%c1_34, %c96_35] : memref<2x128xf32, #tpu.memory_space<vmem>>, vector<1x32xf32>
    %46 = arith.mulf %6, %6 : vector<128x32xf32>
    %cst_36 = arith.constant dense<0.000000e+00> : vector<32xf32>
    %47 = vector.multi_reduction <add>, %46, %cst_36 [0] : vector<128x32xf32> to vector<32xf32>
    %48 = vector.shape_cast %47 : vector<32xf32> to vector<1x32xf32>
    %49 = arith.addf %45, %48 : vector<1x32xf32>
    %c1_37 = arith.constant 1 : index
    %c96_38 = arith.constant 96 : index
    %50 = vector.load %arg3[%c1_37, %c96_38] : memref<2x128xf32, #tpu.memory_space<vmem>>, vector<1x32xf32>
    tpu.vector_store %arg3[%c1_37, %c96_38], %49 {strides = array<i32>} : memref<2x128xf32, #tpu.memory_space<vmem>>, vector<1x32xf32>,
    return
  }
  func.func @transform_0(%arg0: i32) -> (i32, i32) {
    %c0_i32 = arith.constant 0 : i32
    %c0_i32_0 = arith.constant 0 : i32
    return %arg0, %c0_i32 : i32, i32
  }
  func.func @transform_1(%arg0: i32) -> (i32, i32) {
    %c0_i32 = arith.constant 0 : i32
    %c0_i32_0 = arith.constant 0 : i32
    return %arg0, %c0_i32 : i32, i32
  }
  func.func @transform_2(%arg0: i32) -> (i32, i32) {
    %c0_i32 = arith.constant 0 : i32
    %c0_i32_0 = arith.constant 0 : i32
    %c0_i32_1 = arith.constant 0 : i32
    return %c0_i32, %c0_i32_0 : i32, i32
  }
}

</mosaic_0001>

<bundles_post_ra>
// kernel: tpu_custom_call.1
= control target key start
LH: loop header
LB: loop body
LE: loop exit
PB: predicated region body
PF: predicated region fallthrough
CT: control target
= control target key end

     0   :  { %7 = vsyncpa [#allocation3], 0  ;;  %s788_s9 = smov 0   ;;  %s1320_s0 = inlined_call_operand.vmem [shape: f32[256,32], index: 0, kind: input, shape index: {}]   ;;  %s1321_s1 = inlined_call_operand.vmem [shape: f32[256,32], index: 1, kind: input, shape index: {}]   ;;  %s1322_s2 = inlined_call_operand.hbm [shape: f32[2,128], index: 2, kind: output, shape index: {}]  }
   0x1 LB: > { %s794_s10 = sadd.s32 4294967295, %s766_s9   ;;  %p699_p0 = scmp.ge.s32.totalorder %s766_s9, 1  ;;  %s766_s9 = sphi %s788_s9, %s13_s9  }
   0x2   : > { %p120_p1 = scmp.lt.s32.totalorder %s766_s9, 3 }
   0x4   : > { %p121_p2 = pnand %p699_p0, %p120_p1 }
   0x6   : > { %124 = sbr.rel (%p121_p2) target bundleno = 245 (0xf5), region = 28 }
   0xb   : > { %s700_s11 = sshll.u32 %s794_s10, 4  ;;  %p704_p4 = scmp.ne.s32.totalorder %s794_s10, 0 }
   0xc   : > { %p143_p3 = scmp.lt.s32.totalorder %s700_s11, 31 }
   0xd   : > { %157 = sbr.rel (%p704_p4) target bundleno = 20 (0x14), region = 32 }
   0xe   : > { %s1367_s11 = smov (!%p143_p3, %s700_s11), 31 }
   0xf   : > { %s701_s12 = sshll.u32 %s1367_s11, 3 }
  0x10   : > { %s802_s15 = scalar_lea.vmem %s1320_s0, %s701_s12  ;;  %s807_s18 = scalar_lea.vmem %s1321_s1, %s701_s12 }
  0x12   : > { %v768_v0 = vmov 0.0  }
  0x13   : > { %158 = vst [vmem:[#allocation2] sm:$0x3] %v768_v0 }
  0x14 PF: > { %v811_v1 = vld [vmem:[%s807_s18] sm:$0xff]  ;;  %v814_v2 = vld [vmem:[%s807_s18 + $0x8] sm:$0xff]  ;;  %v817_v3 = vld [vmem:[%s807_s18 + $0x10] sm:$0xff]  ;;  %vm224_vm0 = vcmask 261120   ;;  %s769_s19 = smov 32   ;;  %s770_s20 = smov 64  }
  0x15   : > { %v820_v4 = vld [vmem:[%s807_s18 + $0x18] sm:$0xff]  ;;  %v322_v5 = vsel %vm224_vm0, %v811_v1, 0.0  ;;  %v323_v6 = vsel %vm224_vm0, %v814_v2, 0.0  ;;  %v325_v7 = vsel %vm224_vm0, %v817_v3, 0.0  ;;  %v829_v8 = vld [vmem:[%s807_s18 + $0x20] sm:$0xff]  ;;  %v834_v11 = vld [vmem:[%s807_s18 + $0x28] sm:$0xff]  ;;  %v367_v16 = vmul.f32 %v811_v1, %v811_v1 }
  0x16   : > { %v324_v9 = vadd.f32 %v323_v6, %v322_v5  ;;  %v327_v10 = vsel %vm224_vm0, %v820_v4, 0.0  ;;  %v329_v13 = vsel %vm224_vm0, %v829_v8, 0.0  ;;  %v839_v14 = vld [vmem:[%s807_s18 + $0x30] sm:$0xff]  ;;  %v368_v17 = vmul.f32 %v814_v2, %v814_v2  ;;  %v850_v20 = vld [vmem:[%s807_s18 + $0x38] sm:$0xff]  ;;  %v859_v25 = vld [vmem:[%s807_s18 + $0x40] sm:$0xff]  ;;  %s771_s21 = smov 96  }
  0x17   : > { %v369_v18 = vmul.f32 %v817_v3, %v817_v3  ;;  %v331_v19 = vsel %vm224_vm0, %v834_v11, 0.0  ;;  %v370_v22 = vmul.f32 %v820_v4, %v820_v4  ;;  %v333_v23 = vsel %vm224_vm0, %v839_v14, 0.0  ;;  %v867_v32 = vld [vmem:[%s807_s18 + $0x48] sm:$0xff]  ;;  %v875_v38 = vld [vmem:[%s807_s18 + $0x50] sm:$0xff]  ;;  %v883_v44 = vld [vmem:[%s807_s18 + $0x58] sm:$0xff]  ;;  %s772_s22 = smov [#allocation2]  }
  0x18   : > { %v326_v12 = vadd.f32 %v325_v7, %v324_v9  ;;  %v371_v24 = vmul.f32 %v829_v8, %v829_v8  ;;  %v383_v27 = vsel %vm224_vm0, %v367_v16, 0.0  ;;  %v384_v28 = vsel %vm224_vm0, %v368_v17, 0.0  ;;  %1338 = vst [vmem:[#allocation5_spill] sm:$0xff] %v883_v44  ;;  %v891_v50 = vld [vmem:[%s807_s18 + $0x60] sm:$0xff]  ;;  %v899_v56 = vld [vmem:[%s807_s18 + $0x68] sm:$0xff]  ;;  %v907_v62 = vld [vmem:[%s807_s18 + $0x70] sm:$0xff] }
  0x19   : > { %v386_v29 = vsel %vm224_vm0, %v369_v18, 0.0  ;;  %v335_v30 = vsel %vm224_vm0, %v850_v20, 0.0  ;;  %v385_v31 = vadd.f32 %v384_v28, %v383_v27  ;;  %v372_v34 = vmul.f32 %v834_v11, %v834_v11  ;;  %1339 = vst [vmem:[#allocation6_spill] sm:$0xff] %v891_v50  ;;  %v915_v9 = vld [vmem:[%s807_s18 + $0x78] sm:$0xff]  ;;  %v931_v27 = vld [vmem:[%s802_s15] sm:$0xff]  ;;  %v934_v28 = vld [vmem:[%s802_s15 + $0x8] sm:$0xff] }
  0x1a   : > { %v328_v15 = vadd.f32 %v327_v10, %v326_v12  ;;  %v388_v35 = vsel %vm224_vm0, %v370_v22, 0.0  ;;  %v337_v36 = vsel %vm224_vm0, %v859_v25, 0.0  ;;  %v373_v40 = vmul.f32 %v839_v14, %v839_v14  ;;  %1340 = vst [vmem:[#allocation7_spill] sm:$0xff] %v899_v56  ;;  %s642_s23 = sshll.u32 %s772_s22, 4  ;;  %s644_s26 = sshll.u32 %s1322_s2, 4  ;;  %s643_s23 = int_to_ptr.vmem [resolvable:$true] %s642_s23  ;;  %s645_s26 = int_to_ptr.hbm [resolvable:$true] %s644_s26 }
  0x1b   : > { %v387_v37 = vadd.f32 %v386_v29, %v385_v31  ;;  %v390_v41 = vsel %vm224_vm0, %v371_v24, 0.0  ;;  %v339_v42 = vsel %vm224_vm0, %v867_v32, 0.0  ;;  %v374_v46 = vmul.f32 %v850_v20, %v850_v20  ;;  %1341 = vst [vmem:[#allocation8_spill] sm:$0xff] %v907_v62  ;;  %p713_p5 = scmp.eq.s32.totalorder %s794_s10, 1 }
  0x1c   : > { %v330_v21 = vadd.f32 %v329_v13, %v328_v15  ;;  %v392_v47 = vsel %vm224_vm0, %v372_v34, 0.0  ;;  %v341_v48 = vsel %vm224_vm0, %v875_v38, 0.0  ;;  %v375_v52 = vmul.f32 %v859_v25, %v859_v25  ;;  %1342 = vst [vmem:[#allocation9_spill] sm:$0xff] %v915_v9 }
  0x1d   : > { %v389_v43 = vadd.f32 %v388_v35, %v387_v37  ;;  %v394_v53 = vsel %vm224_vm0, %v373_v40, 0.0  ;;  %v343_v54 = vsel %vm224_vm0, %v883_v44, 0.0  ;;  %v376_v58 = vmul.f32 %v867_v32, %v867_v32 }
  0x1e   : > { %v332_v26 = vadd.f32 %v331_v19, %v330_v21  ;;  %v396_v59 = vsel %vm224_vm0, %v374_v46, 0.0  ;;  %v345_v60 = vsel %vm224_vm0, %v891_v50, 0.0  ;;  %v377_v0 = vmul.f32 %v875_v38, %v875_v38 }
  0x1f   : > { %v391_v49 = vadd.f32 %v390_v41, %v389_v43  ;;  %v398_v5 = vsel %vm224_vm0, %v375_v52, 0.0  ;;  %v347_v6 = vsel %vm224_vm0, %v899_v56, 0.0  ;;  %v378_v12 = vmul.f32 %v883_v44, %v883_v44  ;;  %v947_v41 = vld [vmem:[%s802_s15 + $0x10] sm:$0xff]  ;;  %v959_v52 = vld [vmem:[%s802_s15 + $0x28] sm:$0xff] }
  0x20   : > { %v334_v33 = vadd.f32 %v333_v23, %v332_v26  ;;  %v400_v13 = vsel %vm224_vm0, %v376_v58, 0.0  ;;  %v349_v15 = vsel %vm224_vm0, %v907_v62, 0.0  ;;  %v379_v18 = vmul.f32 %v891_v50, %v891_v50  ;;  %v970_v58 = vld [vmem:[%s802_s15 + $0x38] sm:$0xff] }
  0x21   : > { %v393_v55 = vadd.f32 %v392_v47, %v391_v49  ;;  %v402_v19 = vsel %vm224_vm0, %v377_v0, 0.0  ;;  %v351_v21 = vsel %vm224_vm0, %v915_v9, 0.0  ;;  %v380_v24 = vmul.f32 %v899_v56, %v899_v56  ;;  %v953_v49 = vld [vmem:[%s802_s15 + $0x18] sm:$0xff] }
  0x22   : > { %v336_v39 = vadd.f32 %v335_v30, %v334_v33  ;;  %v404_v26 = vsel %vm224_vm0, %v378_v12, 0.0  ;;  %v225_v30 = vsel %vm224_vm0, %v931_v27, 0.0  ;;  %v226_v31 = vsel %vm224_vm0, %v934_v28, 0.0 }
  0x23   : > { %v395_v61 = vadd.f32 %v394_v53, %v393_v55  ;;  %v381_v34 = vmul.f32 %v907_v62, %v907_v62  ;;  %v406_v35 = vsel %vm224_vm0, %v379_v18, 0.0  ;;  %v408_v40 = vsel %vm224_vm0, %v380_v24, 0.0  ;;  %v1020_v24 = vld [vmem:[%s802_s15 + $0x68] sm:$0xff] }
  0x24   : > { %v338_v45 = vadd.f32 %v337_v36, %v336_v39  ;;  %v382_v39 = vmul.f32 %v915_v9, %v915_v9  ;;  %v963_v53 = vsub.f32 %v931_v27, %v811_v1  ;;  %v980_v0 = vsub.f32 %v934_v28, %v814_v2  ;;  %1345 = vst [vmem:[#allocation12_spill] sm:$0xff] %v1020_v24 }
  0x25   : > { %v397_v7 = vadd.f32 %v396_v59, %v395_v61  ;;  %v410_v47 = vsel %vm224_vm0, %v381_v34, 0.0  ;;  %v973_v61 = vld [vmem:[%s802_s15 + $0x40] sm:$0xff]  ;;  %v993_v12 = vsub.f32 %v953_v49, %v820_v4  ;;  %vm263_vm1 = vcmask 253952  }
  0x26   : > { %v340_v51 = vadd.f32 %v339_v42, %v338_v45  ;;  %v227_v42 = vadd.f32 %v226_v31, %v225_v30  ;;  %v228_v45 = vsel %vm224_vm0, %v947_v41, 0.0  ;;  %v412_v55 = vsel %vm224_vm0, %v382_v39, 0.0 }
  0x27   : > { %v399_v16 = vadd.f32 %v398_v5, %v397_v7  ;;  %v984_v5 = vsub.f32 %v947_v41, %v817_v3  ;;  %vm364_vm2 = vcmask 516352   ;;  %vm469_vm3 = vcmask 778752  }
  0x28   : > { %v342_v57 = vadd.f32 %v341_v48, %v340_v51  ;;  %v956_v51 = vld [vmem:[%s802_s15 + $0x20] sm:$0xff]  ;;  %v229_v59 = vadd.f32 %v228_v45, %v227_v42  ;;  %v1048_v45 = vld [vmem:[%s802_s15 + $0x78] sm:$0xff]  ;;  %vm574_vm4 = vcmask 1041152  }
  0x29   : > { %v401_v22 = vadd.f32 %v400_v13, %v399_v16  ;;  %v997_v13 = vsub.f32 %v956_v51, %v829_v8  ;;  %v232_v34 = vsel %vm224_vm0, %v956_v51, 0.0  ;;  %v430_v42 = vsel %vm224_vm0, %v984_v5, 0.0  ;;  %1347 = vst [vmem:[#allocation14_spill] sm:$0xff] %v1048_v45 }
  0x2a   : > { %v344_v63 = vadd.f32 %v343_v54, %v342_v57  ;;  %v967_v57 = vld [vmem:[%s802_s15 + $0x30] sm:$0xff] }
  0x2b   : > { %v403_v29 = vadd.f32 %v402_v19, %v401_v22  ;;  %v1008_v18 = vsub.f32 %v967_v57, %v839_v14  ;;  %v1012_v19 = vsub.f32 %v970_v58, %v850_v20 }
  0x2c   : > { %v346_v10 = vadd.f32 %v345_v60, %v344_v63  ;;  %v976_v63 = vld [vmem:[%s802_s15 + $0x48] sm:$0xff] }
  0x2d   : > { %v405_v36 = vadd.f32 %v404_v26, %v403_v29  ;;  %v1024_v26 = vsub.f32 %v973_v61, %v859_v25  ;;  %v1028_v29 = vsub.f32 %v976_v63, %v867_v32 }
  0x2e   : > { %v348_v17 = vadd.f32 %v347_v6, %v346_v10  ;;  %v230_v6 = vsel %vm224_vm0, %v953_v49, 0.0  ;;  %v989_v10 = vld [vmem:[%s802_s15 + $0x50] sm:$0xff] }
  0x2f   : > { %v407_v43 = vadd.f32 %v406_v35, %v405_v36  ;;  %v231_v30 = vadd.f32 %v230_v6, %v229_v59  ;;  %v428_v35 = vsel %vm224_vm0, %v980_v0, 0.0  ;;  %v267_v59 = vmul.f32 %v934_v28, %v934_v28 }
  0x30   : > { %v350_v23 = vadd.f32 %v349_v15, %v348_v17  ;;  %v1001_v15 = vsub.f32 %v959_v52, %v834_v11  ;;  %v1004_v17 = vld [vmem:[%s802_s15 + $0x58] sm:$0xff] }
  0x31   : > { %v409_v48 = vadd.f32 %v408_v40, %v407_v43  ;;  %1343 = vst [vmem:[#allocation10_spill] sm:$0xff] %v1004_v17  ;;  %v1043_v39 = vsub.f32 %v1004_v17, %v883_v44 }
  0x32   : > { %v352_v33 = vadd.f32 %v351_v21, %v350_v23  ;;  %v427_v21 = vsel %vm224_vm0, %v963_v53, 0.0  ;;  %v1017_v23 = vld [vmem:[%s802_s15 + $0x60] sm:$0xff] }
  0x33   : > { %v411_v60 = vadd.f32 %v410_v47, %v409_v48  ;;  %1344 = vst [vmem:[#allocation11_spill] sm:$0xff] %v1017_v23  ;;  %v429_v40 = vadd.f32 %v428_v35, %v427_v21  ;;  %v1056_v47 = vsub.f32 %v1020_v24, %v899_v56  ;;  %v432_v48 = vsel %vm224_vm0, %v993_v12, 0.0 }
  0x34   : > { %v353_v37 = vrot.slane %v352_v33, 4  ;;  %v434_v21 = vsel %vm224_vm0, %v997_v13, 0.0 }
  0x35   : > { %v413_v16 = vadd.f32 %v412_v55, %v411_v60  ;;  %v266_v55 = vmul.f32 %v931_v27, %v931_v27  ;;  %v431_v60 = vadd.f32 %v430_v42, %v429_v40  ;;  %v268_v40 = vmul.f32 %v947_v41, %v947_v41 }
  0x36   : > { %v354_v46 = vadd.f32 %v353_v37, %v352_v33  ;;  %v1032_v33 = vsub.f32 %v989_v10, %v875_v38  ;;  %v1039_v37 = vld [vmem:[%s802_s15 + $0x70] sm:$0xff]  ;;  %v436_v42 = vsel %vm224_vm0, %v1001_v15, 0.0 }
  0x37   : > { %v414_v31 = vrot.slane %v413_v16, 4  ;;  %1346 = vst [vmem:[#allocation13_spill] sm:$0xff] %v1039_v37 }
  0x38   : > { %v355_v54 = vrot.slane %v354_v46, 2 }
  0x39   : > { %v415_v43 = vadd.f32 %v414_v31, %v413_v16  ;;  %v234_v16 = vsel %vm224_vm0, %v959_v52, 0.0  ;;  %v238_v31 = vsel %vm224_vm0, %v970_v58, 0.0 }
  0x3a   : > { %v356_v7 = vadd.f32 %v355_v54, %v354_v46  ;;  %v1052_v46 = vsub.f32 %v1017_v23, %v891_v50  ;;  %v233_v54 = vadd.f32 %v232_v34, %v231_v30  ;;  %v236_v30 = vsel %vm224_vm0, %v967_v57, 0.0 }
  0x3b   : > { %v416_v6 = vrot.slane %v415_v43, 2  ;;  %v433_v34 = vadd.f32 %v432_v48, %v431_v60  ;;  %v1091_v48 = vsel %vm224_vm0, %v976_v63, 0.0  ;;  %v438_v60 = vsel %vm224_vm0, %v1008_v18, 0.0 }
  0x3c   : > { %v357_v22 = vrot.slane %v356_v7, 1  ;;  %v440_v50 = vsel %vm224_vm0, %v1012_v19, 0.0 }
  0x3d   : > { %v417_v35 = vadd.f32 %v416_v6, %v415_v43  ;;  %v1095_v43 = vsel %vm224_vm0, %v989_v10, 0.0 }
  0x3e   : > { %v358_v36 = vadd.f32 %v357_v22, %v356_v7  ;;  %v1067_v7 = vsub.f32 %v1039_v37, %v907_v62  ;;  %v1075_v22 = vsub.f32 %v1048_v45, %v915_v9  ;;  %v235_v62 = vadd.f32 %v234_v16, %v233_v54  ;;  %1348 = vst [vmem:[#allocation15_spill] sm:$0xff] %v1095_v43 }
  0x3f   : > { %v282_v9 = vsel %vm224_vm0, %v266_v55, 0.0  ;;  %v283_v45 = vsel %vm224_vm0, %v267_v59, 0.0  ;;  %v435_v37 = vadd.f32 %v434_v21, %v433_v34  ;;  %v418_v56 = vrot.slane %v417_v35, 1 }
  0x40   : > { %360 = vrot.lane.b32.xlu0 %v358_v36, %s769_s19  ;;  %v240_v36 = vsel %vm224_vm0, %v973_v61, 0.0  ;;  %v1101_v54 = vsel %vm224_vm0, %v1004_v17, 0.0  ;;  %v1105_v55 = vsel %vm224_vm0, %v1017_v23, 0.0  ;;  %v1109_v59 = vsel %vm224_vm0, %v1020_v24, 0.0 }
  0x41   : > { %1349 = vst [vmem:[#allocation16_spill] sm:$0xff] %v1101_v54  ;;  %v437_v6 = vadd.f32 %v436_v42, %v435_v37  ;;  %v419_v16 = vadd.f32 %v418_v56, %v417_v35  ;;  %v269_v21 = vmul.f32 %v953_v49, %v953_v49  ;;  %v284_v34 = vadd.f32 %v283_v45, %v282_v9 }
  0x42   : > { %1350 = vst [vmem:[#allocation17_spill] sm:$0xff] %v1105_v55  ;;  %v237_v43 = vadd.f32 %v236_v30, %v235_v62  ;;  %v285_v54 = vsel %vm224_vm0, %v268_v40, 0.0  ;;  %v472_v55 = vmul.f32 %v963_v53, %v963_v53  ;;  %v270_v37 = vmul.f32 %v956_v51, %v956_v51 }
  0x43   : > { %1351 = vst [vmem:[#allocation18_spill] sm:$0xff] %v1109_v59  ;;  %v439_v44 = vadd.f32 %v438_v60, %v437_v6  ;;  %v442_v56 = vsel %vm224_vm0, %v1024_v26, 0.0  ;;  %v473_v9 = vmul.f32 %v980_v0, %v980_v0  ;;  %v474_v62 = vmul.f32 %v984_v5, %v984_v5 }
  0x44   : > { %v271_v45 = vmul.f32 %v959_v52, %v959_v52  ;;  %v272_v53 = vmul.f32 %v967_v57, %v967_v57  ;;  %v273_v30 = vmul.f32 %v970_v58, %v970_v58  ;;  %v274_v40 = vmul.f32 %v973_v61, %v973_v61 }
  0x45   : > { %v441_v35 = vadd.f32 %v440_v50, %v439_v44  ;;  %v286_v42 = vadd.f32 %v285_v54, %v284_v34  ;;  %v444_v0 = vsel %vm224_vm0, %v1028_v29, 0.0  ;;  %v475_v5 = vmul.f32 %v993_v12, %v993_v12 }
  0x46   : > { %v239_v60 = vadd.f32 %v238_v31, %v237_v43  ;;  %v287_v6 = vsel %vm224_vm0, %v269_v21, 0.0  ;;  %v488_v59 = vsel %vm224_vm0, %v472_v55, 0.0  ;;  %v446_v24 = vsel %vm224_vm0, %v1032_v33, 0.0 }
  0x47   : > { %v476_v44 = vmul.f32 %v997_v13, %v997_v13  ;;  %v489_v50 = vsel %vm224_vm0, %v473_v9, 0.0  ;;  %v491_v54 = vsel %vm224_vm0, %v474_v62, 0.0  ;;  %v275_v34 = vmul.f32 %v976_v63, %v976_v63 }
  0x48   : > { %421 = vrot.lane.b32.xlu0 %v419_v16, %s769_s19  ;;  %v443_v16 = vadd.f32 %v442_v56, %v441_v35  ;;  %v1151_v12 = vmul.f32 %v989_v10, %v989_v10  ;;  %v490_v43 = vadd.f32 %v489_v50, %v488_v59  ;;  %v288_v55 = vadd.f32 %v287_v6, %v286_v42 }
  0x49   : > { %v448_v21 = vsel %vm224_vm0, %v1043_v39, 0.0  ;;  %v477_v13 = vmul.f32 %v1001_v15, %v1001_v15  ;;  %v493_v56 = vsel %vm224_vm0, %v475_v5, 0.0  ;;  %v241_v9 = vadd.f32 %v240_v36, %v239_v60 }
  0x4a   : > { %v445_v31 = vadd.f32 %v444_v0, %v443_v16  ;;  %v289_v62 = vsel %vm224_vm0, %v270_v37, 0.0  ;;  %v492_v23 = vadd.f32 %v491_v54, %v490_v43  ;;  %v291_v17 = vsel %vm224_vm0, %v271_v45, 0.0 }
  0x4b   : > { %v450_v0 = vsel %vm224_vm0, %v1052_v46, 0.0  ;;  %v478_v59 = vmul.f32 %v1008_v18, %v1008_v18  ;;  %v495_v42 = vsel %vm224_vm0, %v476_v44, 0.0  ;;  %v293_v6 = vsel %vm224_vm0, %v272_v53, 0.0 }
  0x4c   : > { %v447_v35 = vadd.f32 %v446_v24, %v445_v31  ;;  %v1167_v15 = vsel %vm224_vm0, %v273_v30, 0.0  ;;  %v494_v5 = vadd.f32 %v493_v56, %v492_v23  ;;  %v290_v37 = vadd.f32 %v289_v62, %v288_v55 }
  0x4d   : > { %v452_v24 = vsel %vm224_vm0, %v1056_v47, 0.0  ;;  %v479_v45 = vmul.f32 %v1012_v19, %v1012_v19  ;;  %v497_v60 = vsel %vm224_vm0, %v477_v13, 0.0  ;;  %v1175_v18 = vsel %vm224_vm0, %v274_v40, 0.0 }
  0x4e   : > { %v449_v36 = vadd.f32 %v448_v21, %v447_v35  ;;  %v496_v44 = vadd.f32 %v495_v42, %v494_v5  ;;  %v207_v53 = vmul.f32 %v811_v1, %v931_v27  ;;  %v1180_v30 = vadd.f32 %v1091_v48, %v241_v9 }
  0x4f   : > { %v454_v23 = vsel %vm224_vm0, %v1067_v7, 0.0  ;;  %v480_v50 = vmul.f32 %v1024_v26, %v1024_v26  ;;  %v499_v19 = vsel %vm224_vm0, %v478_v59, 0.0  ;;  %v208_v40 = vmul.f32 %v814_v2, %v934_v28 }
  0x50   : > { %v451_v16 = vadd.f32 %v450_v0, %v449_v36  ;;  %v498_v31 = vadd.f32 %v497_v60, %v496_v44  ;;  %v209_v43 = vmul.f32 %v817_v3, %v947_v41  ;;  %v292_v1 = vadd.f32 %v291_v17, %v290_v37 }
  0x51   : > { %v456_v27 = vsel %vm224_vm0, %v1075_v22, 0.0  ;;  %v481_v48 = vmul.f32 %v1028_v29, %v1028_v29  ;;  %v501_v55 = vsel %vm224_vm0, %v479_v45, 0.0  ;;  %v210_v13 = vmul.f32 %v820_v4, %v953_v49 }
  0x52   : > { %v453_v54 = vadd.f32 %v452_v24, %v451_v16  ;;  %v500_v21 = vadd.f32 %v499_v19, %v498_v31  ;;  %v532_v56 = vsel %vm224_vm0, %v207_v53, 0.0  ;;  %v1200_v2 = vsel %vm224_vm0, %v275_v34, 0.0 }
  0x53   : > { %v482_v3 = vmul.f32 %v1032_v33, %v1032_v33  ;;  %v503_v28 = vsel %vm224_vm0, %v480_v50, 0.0  ;;  %v211_v41 = vmul.f32 %v829_v8, %v956_v51  ;;  %v533_v9 = vsel %vm224_vm0, %v208_v40, 0.0 }
  0x54   : > { %v455_v26 = vadd.f32 %v454_v23, %v453_v54  ;;  %v502_v29 = vadd.f32 %v501_v55, %v500_v21  ;;  %v535_v62 = vsel %vm224_vm0, %v209_v43, 0.0  ;;  %v1209_v4 = vadd.f32 %v293_v6, %v292_v1 }
  0x55   : > { %v483_v49 = vmul.f32 %v1043_v39, %v1043_v39  ;;  %v505_v34 = vsel %vm224_vm0, %v481_v48, 0.0  ;;  %v534_v35 = vadd.f32 %v533_v9, %v532_v56  ;;  %v212_v59 = vmul.f32 %v834_v11, %v959_v52  ;;  %v1352_v9 = vld [vmem:[#allocation10_spill] sm:$0xff] }
  0x56   : > { %v457_v17 = vadd.f32 %v456_v27, %v455_v26  ;;  %v504_v0 = vadd.f32 %v503_v28, %v502_v29  ;;  %v537_v8 = vsel %vm224_vm0, %v210_v13, 0.0  ;;  %v484_v51 = vmul.f32 %v1052_v46, %v1052_v46 }
  0x57   : > { %v485_v42 = vmul.f32 %v1056_v47, %v1056_v47  ;;  %v507_v6 = vsel %vm224_vm0, %v482_v3, 0.0  ;;  %v536_v36 = vadd.f32 %v535_v62, %v534_v35  ;;  %v213_v37 = vmul.f32 %v839_v14, %v967_v57 }
  0x58   : > { %v458_v33 = vrot.slane %v457_v17, 4  ;;  %v506_v5 = vadd.f32 %v505_v34, %v504_v0  ;;  %v539_v24 = vsel %vm224_vm0, %v211_v41, 0.0  ;;  %v486_v11 = vmul.f32 %v1067_v7, %v1067_v7 }
  0x59   : > { %v487_v52 = vmul.f32 %v1075_v22, %v1075_v22  ;;  %v509_v46 = vsel %vm224_vm0, %v483_v49, 0.0  ;;  %v538_v45 = vadd.f32 %v537_v8, %v536_v36  ;;  %v214_v16 = vmul.f32 %v850_v20, %v970_v58  ;;  %v1354_v49 = vld [vmem:[#allocation15_spill] sm:$0xff] }
  0x5a   : > { %v459_v39 = vadd.f32 %v458_v33, %v457_v17  ;;  %v508_v60 = vadd.f32 %v507_v6, %v506_v5  ;;  %v541_v44 = vsel %vm224_vm0, %v212_v59, 0.0  ;;  %v511_v14 = vsel %vm224_vm0, %v484_v51, 0.0  ;;  %v1355_v8 = vld [vmem:[#allocation11_spill] sm:$0xff]  ;;  %v1356_v51 = vld [vmem:[#allocation6_spill] sm:$0xff] }
  0x5b   : > { %v513_v57 = vsel %vm224_vm0, %v485_v42, 0.0  ;;  %v215_v7 = vmul.f32 %v859_v25, %v973_v61  ;;  %v540_v23 = vadd.f32 %v539_v24, %v538_v45  ;;  %v543_v19 = vsel %vm224_vm0, %v213_v37, 0.0 }
  0x5c   : > { %v460_v47 = vrot.slane %v459_v39, 2  ;;  %v510_v22 = vadd.f32 %v509_v46, %v508_v60  ;;  %v577_v54 = vmul.f32 %v207_v53, %v207_v53  ;;  %v515_v31 = vsel %vm224_vm0, %v486_v11, 0.0  ;;  %v1358_v46 = vld [vmem:[#allocation7_spill] sm:$0xff]  ;;  %v1359_v60 = vld [vmem:[#allocation16_spill] sm:$0xff] }
  0x5d   : > { %v542_v1 = vadd.f32 %v541_v44, %v540_v23  ;;  %v578_v27 = vmul.f32 %v208_v40, %v208_v40  ;;  %v579_v20 = vmul.f32 %v209_v43, %v209_v43  ;;  %v216_v55 = vmul.f32 %v867_v32, %v976_v63 }
  0x5e   : > { %v461_v50 = vadd.f32 %v460_v47, %v459_v39  ;;  %v512_v48 = vadd.f32 %v511_v14, %v510_v22  ;;  %v545_v26 = vsel %vm224_vm0, %v214_v16, 0.0  ;;  %v517_v25 = vsel %vm224_vm0, %v487_v52, 0.0  ;;  %v1360_v22 = vld [vmem:[#allocation13_spill] sm:$0xff] }
  0x5f   : > { %v217_v61 = vmul.f32 %v875_v38, %v989_v10  ;;  %v544_v21 = vadd.f32 %v543_v19, %v542_v1  ;;  %v580_v56 = vmul.f32 %v210_v13, %v210_v13  ;;  %v547_v28 = vsel %vm224_vm0, %v215_v7, 0.0  ;;  %v1353_v38 = vld [vmem:[#allocation5_spill] sm:$0xff] }
  0x60   : > { %v462_v58 = vrot.slane %v461_v50, 1  ;;  %v514_v3 = vadd.f32 %v513_v57, %v512_v48  ;;  %v593_v40 = vsel %vm224_vm0, %v577_v54, 0.0  ;;  %v581_v17 = vmul.f32 %v211_v41, %v211_v41  ;;  %v1363_v48 = vld [vmem:[#allocation9_spill] sm:$0xff] }
  0x61   : > { %v546_v43 = vadd.f32 %v545_v26, %v544_v21  ;;  %v594_v29 = vsel %vm224_vm0, %v578_v27, 0.0  ;;  %v596_v32 = vsel %vm224_vm0, %v579_v20, 0.0  ;;  %v218_v10 = vmul.f32 %v1353_v38, %v1352_v9 }
  0x62   : > { %v463_v53 = vadd.f32 %v462_v58, %v461_v50  ;;  %v516_v63 = vadd.f32 %v515_v31, %v514_v3  ;;  %v549_v13 = vsel %vm224_vm0, %v216_v55, 0.0  ;;  %v595_v62 = vadd.f32 %v594_v29, %v593_v40  ;;  %v1362_v58 = vld [vmem:[#allocation14_spill] sm:$0xff] }
  0x63   : > { %v245_v34 = vadd.f32 %v1354_v49, %v1180_v30  ;;  %v548_v35 = vadd.f32 %v547_v28, %v546_v43  ;;  %v582_v33 = vmul.f32 %v212_v59, %v212_v59  ;;  %v598_v41 = vsel %vm224_vm0, %v580_v56, 0.0  ;;  %v1357_v30 = vld [vmem:[#allocation12_spill] sm:$0xff]  ;;  %v1364_v28 = vld [vmem:[#allocation17_spill] sm:$0xff] }
  0x64   : > { %465 = vrot.lane.b32.xlu1 %v463_v53, %s770_s20  ;;  %v518_v0 = vadd.f32 %v517_v25, %v516_v63  ;;  %v219_v42 = vmul.f32 %v1356_v51, %v1355_v8  ;;  %v551_v6 = vsel %vm224_vm0, %v217_v61, 0.0  ;;  %v597_v36 = vadd.f32 %v596_v32, %v595_v62 }
  0x65   : > { %v296_v39 = vadd.f32 %v1167_v15, %v1209_v4  ;;  %v550_v5 = vadd.f32 %v549_v13, %v548_v35  ;;  %v583_v24 = vmul.f32 %v213_v37, %v213_v37  ;;  %v600_v11 = vsel %vm224_vm0, %v581_v17, 0.0  ;;  %v1361_v15 = vld [vmem:[#allocation8_spill] sm:$0xff]  ;;  %v1365_v35 = vld [vmem:[#allocation18_spill] sm:$0xff] }
  0x66   : > { %v519_v52 = vrot.slane %v518_v0, 4  ;;  %v220_v59 = vmul.f32 %v1358_v46, %v1357_v30  ;;  %v553_v45 = vsel %vm224_vm0, %v218_v10, 0.0  ;;  %v599_v47 = vadd.f32 %v598_v41, %v597_v36 }
  0x67   : > { %v247_v44 = vadd.f32 %v1359_v60, %v245_v34  ;;  %v552_v14 = vadd.f32 %v551_v6, %v550_v5  ;;  %v584_v57 = vmul.f32 %v214_v16, %v214_v16  ;;  %v602_v23 = vsel %vm224_vm0, %v582_v33, 0.0 }
  0x68   : > { %v520_v50 = vadd.f32 %v519_v52, %v518_v0  ;;  %v221_v4 = vmul.f32 %v1361_v15, %v1360_v22  ;;  %v555_v37 = vsel %vm224_vm0, %v219_v42, 0.0  ;;  %v601_v19 = vadd.f32 %v600_v11, %v599_v47 }
  0x69   : > { %v298_v54 = vadd.f32 %v1175_v18, %v296_v39  ;;  %v554_v31 = vadd.f32 %v553_v45, %v552_v14  ;;  %v585_v1 = vmul.f32 %v215_v7, %v215_v7  ;;  %v604_v27 = vsel %vm224_vm0, %v583_v24, 0.0 }
  0x6a   : > { %v521_v20 = vrot.slane %v520_v50, 2  ;;  %v222_v26 = vmul.f32 %v1363_v48, %v1362_v58  ;;  %v557_v16 = vsel %vm224_vm0, %v220_v59, 0.0  ;;  %v603_v25 = vadd.f32 %v602_v23, %v601_v19 }
  0x6b   : > { %v277_v21 = vmul.f32 %v1352_v9, %v1352_v9  ;;  %v556_v56 = vadd.f32 %v555_v37, %v554_v31  ;;  %v586_v53 = vmul.f32 %v216_v55, %v216_v55  ;;  %v606_v3 = vsel %vm224_vm0, %v584_v57, 0.0 }
  0x6c   : > { %v249_v18 = vadd.f32 %v1364_v28, %v247_v44  ;;  %v522_v40 = vadd.f32 %v521_v20, %v520_v50  ;;  %v559_v7 = vsel %vm224_vm0, %v221_v4, 0.0  ;;  %v605_v43 = vadd.f32 %v604_v27, %v603_v25 }
  0x6d   : > { %v300_v17 = vadd.f32 %v1200_v2, %v298_v54  ;;  %v558_v29 = vadd.f32 %v557_v16, %v556_v56  ;;  %v587_v32 = vmul.f32 %v217_v61, %v217_v61  ;;  %v608_v63 = vsel %vm224_vm0, %v585_v1, 0.0 }
  0x6e   : > { %v301_v38 = vsel %vm224_vm0, %v1151_v12, 0.0  ;;  %v523_v9 = vrot.slane %v522_v40, 1  ;;  %v561_v55 = vsel %vm224_vm0, %v222_v26, 0.0  ;;  %v607_v13 = vadd.f32 %v606_v3, %v605_v43 }
  0x6f   : > { %v560_v62 = vadd.f32 %v559_v7, %v558_v29  ;;  %v588_v49 = vmul.f32 %v218_v10, %v218_v10  ;;  %v610_v34 = vsel %vm224_vm0, %v586_v53, 0.0  ;;  %v251_v33 = vadd.f32 %v1365_v35, %v249_v18 }
  0x70   : > { %v252_v2 = vsel %vm224_vm0, %v1360_v22, 0.0  ;;  %v524_v41 = vadd.f32 %v523_v9, %v522_v40  ;;  %v609_v61 = vadd.f32 %v608_v63, %v607_v13  ;;  %v302_v0 = vadd.f32 %v301_v38, %v300_v17  ;;  %v223_v13 = vld [vmem:[#allocation2] sm:$0x1] }
  0x71   : > { %v562_v51 = vadd.f32 %v561_v55, %v560_v62  ;;  %v589_v6 = vmul.f32 %v219_v42, %v219_v42  ;;  %v612_v12 = vsel %vm224_vm0, %v587_v32, 0.0  ;;  %v278_v36 = vmul.f32 %v1355_v8, %v1355_v8 }
  0x72   : > { %v303_v39 = vsel %vm224_vm0, %v277_v21, 0.0  ;;  %526 = vrot.lane.b32.xlu1 %v524_v41, %s770_s20  ;;  %v611_v10 = vadd.f32 %v610_v34, %v609_v61  ;;  %v590_v24 = vmul.f32 %v220_v59, %v220_v59  ;;  %v614_v11 = vsel %vm224_vm0, %v588_v49, 0.0 }
  0x73   : > { %v563_v5 = vrot.slane %v562_v51, 4  ;;  %v253_v52 = vadd.f32 %v252_v2, %v251_v33  ;;  %v254_v46 = vsel %vm224_vm0, %v1362_v58, 0.0  ;;  %v304_v42 = vadd.f32 %v303_v39, %v302_v0  ;;  %v265_v2 = vld [vmem:[#allocation2 + $0x1] sm:$0x1] }
  0x74   : > { %v613_v45 = vadd.f32 %v612_v12, %v611_v10  ;;  %v591_v60 = vmul.f32 %v221_v4, %v221_v4  ;;  %v616_v44 = vsel %vm224_vm0, %v589_v6, 0.0  ;;  %v279_v8 = vmul.f32 %v1357_v30, %v1357_v30 }
  0x75   : > { %v564_v47 = vadd.f32 %v563_v5, %v562_v51  ;;  %v305_v14 = vsel %vm224_vm0, %v278_v36, 0.0  ;;  %v592_v59 = vmul.f32 %v222_v26, %v222_v26  ;;  %v618_v50 = vsel %vm224_vm0, %v590_v24, 0.0 }
  0x76   : > { %v615_v57 = vadd.f32 %v614_v11, %v613_v45  ;;  %v255_v15 = vadd.f32 %v254_v46, %v253_v52  ;;  %v306_v19 = vadd.f32 %v305_v14, %v304_v42  ;;  %v620_v31 = vsel %vm224_vm0, %v591_v60, 0.0 }
  0x77   : > { %v565_v23 = vrot.slane %v564_v47, 2  ;;  %v280_v4 = vmul.f32 %v1360_v22, %v1360_v22  ;;  %v307_v1 = vsel %vm224_vm0, %v279_v8, 0.0  ;;  %v622_v20 = vsel %vm224_vm0, %v592_v59, 0.0 }
  0x78   : > { %v617_v37 = vadd.f32 %v616_v44, %v615_v57  ;;  %v256_v48 = vrot.slane %v255_v15, 4  ;;  %v308_v26 = vadd.f32 %v307_v1, %v306_v19  ;;  %v281_v21 = vmul.f32 %v1362_v58, %v1362_v58 }
  0x79   : > { %v566_v54 = vadd.f32 %v565_v23, %v564_v47  ;;  %v309_v56 = vsel %vm224_vm0, %v280_v4, 0.0 }
  0x7a   : > { %v619_v27 = vadd.f32 %v618_v50, %v617_v37  ;;  %v257_v3 = vadd.f32 %v256_v48, %v255_v15  ;;  %v310_v28 = vadd.f32 %v309_v56, %v308_v26  ;;  %v311_v18 = vsel %vm224_vm0, %v281_v21, 0.0 }
  0x7b   : > { %v567_v30 = vrot.slane %v566_v54, 1 }
  0x7c   : > { %v621_v16 = vadd.f32 %v620_v31, %v619_v27  ;;  %v258_v7 = vrot.slane %v257_v3, 2  ;;  %v312_v17 = vadd.f32 %v311_v18, %v310_v28 }
  0x7d   : > { %v568_v25 = vadd.f32 %v567_v30, %v566_v54 }
  0x7e   : > { %v623_v53 = vadd.f32 %v622_v20, %v621_v16  ;;  %v259_v32 = vadd.f32 %v258_v7, %v257_v3  ;;  %v313_v38 = vrot.slane %v312_v17, 4 }
  0x7f   : > { %570 = vrot.lane.b32.xlu2 %v568_v25, %s771_s21 }
  0x80   : > { %v624_v22 = vrot.slane %v623_v53, 4  ;;  %v260_v58 = vrot.slane %v259_v32, 1  ;;  %v314_v55 = vadd.f32 %v313_v38, %v312_v17 }
  0x82   : > { %v625_v40 = vadd.f32 %v624_v22, %v623_v53  ;;  %v261_v62 = vadd.f32 %v260_v58, %v259_v32  ;;  %v315_v34 = vrot.slane %v314_v55, 2 }
  0x84   : > { %v626_v43 = vrot.slane %v625_v40, 2  ;;  %v262_v49 = vadd.f32 %v261_v62, %v223_v13  ;;  %v316_v35 = vadd.f32 %v315_v34, %v314_v55 }
  0x86   : > { %v627_v29 = vadd.f32 %v626_v43, %v625_v40  ;;  %264 = vst.msk [vmem:[#allocation2] sm:$0x1] %vm263_vm1, %v262_v49  ;;  %v317_v33 = vrot.slane %v316_v35, 1 }
  0x88   : > { %v628_v63 = vrot.slane %v627_v29, 1  ;;  %v318_v41 = vadd.f32 %v317_v33, %v316_v35 }
  0x8a   : > { %v629_v9 = vadd.f32 %v628_v63, %v627_v29  ;;  %v319_v61 = vadd.f32 %v318_v41, %v265_v2 }
  0x8c   : > { %631 = vrot.lane.b32.xlu2 %v629_v9, %s771_s21  ;;  %320 = vst.msk [vmem:[#allocation2 + $0x1] sm:$0x1] %vm263_vm1, %v319_v61 }
  0x8d   : > { %v321_v0 = vld [vmem:[#allocation2] sm:$0x1] }
  0x93   : > { %v366_v12 = vld [vmem:[#allocation2 + $0x1] sm:$0x1] }
  0xb2   : > { %v361_v51 = vpop.permute.xlu0 %360 }
  0xb3   : > { %v363_v6 = vadd.f32 %v361_v51, %v321_v0 }
  0xb5   : > { %365 = vst.msk [vmem:[#allocation2] sm:$0x1] %vm364_vm2, %v363_v6 }
  0xba   : > { %v422_v36 = vpop.permute.xlu0 %421 }
  0xbb   : > { %v424_v39 = vadd.f32 %v422_v36, %v366_v12 }
  0xbc   : > { %v426_v10 = vld [vmem:[#allocation2] sm:$0x1] }
  0xbd   : > { %425 = vst.msk [vmem:[#allocation2 + $0x1] sm:$0x1] %vm364_vm2, %v424_v39 }
  0xc4   : > { %v471_v45 = vld [vmem:[#allocation2 + $0x1] sm:$0x1] }
  0xd6   : > { %v466_v5 = vpop.permute.xlu1 %465 }
  0xd7   : > { %v468_v24 = vadd.f32 %v466_v5, %v426_v10 }
  0xd9   : > { %470 = vst.msk [vmem:[#allocation2] sm:$0x1] %vm469_vm3, %v468_v24  ;;  %v571_v11 = vpop.permute.xlu2 %570 }
  0xe0   : > { %v531_v52 = vld [vmem:[#allocation2] sm:$0x1] }
  0xe1   : > { %v573_v46 = vadd.f32 %v571_v11, %v531_v52 }
  0xe3   : > { %575 = vst.msk [vmem:[#allocation2] sm:$0x1] %vm574_vm4, %v573_v46 }
  0xe4   : > { %v527_v42 = vpop.permute.xlu1 %526 }
  0xe5   : > { %v529_v47 = vadd.f32 %v527_v42, %v471_v45 }
  0xe6   : > { %v632_v60 = vpop.permute.xlu2 %631 }
  0xe7   : > { %530 = vst.msk [vmem:[#allocation2 + $0x1] sm:$0x1] %vm469_vm3, %v529_v47 }
  0xee   : > { %v576_v44 = vld [vmem:[#allocation2 + $0x1] sm:$0x1] }
  0xef   : > { %v634_v8 = vadd.f32 %v632_v60, %v576_v44 }
  0xf1   : > { %635 = vst.msk [vmem:[#allocation2 + $0x1] sm:$0x1] %vm574_vm4, %v634_v8 }
  0xf2   : > { %710 = dma.vmem_to_hbm [thread:$0]  (%p713_p5), %s643_s23, 32, %s645_s26, [#allocation3]  }
  0xf3   : > { %761 = dma.done.wait (%p713_p5), [#allocation3], 32  }
  0xf4   : > { %763 = vsyncadd (%p713_p5), [#allocation3], 4294967264 }
  0xf5 PF: > { %s13_s9 = sadd.s32 1, %s766_s9  }
  0xf6   : > { %p10_p6 = scmp.ge.s32.totalorder %s13_s9, 4  }
  0xf8   :  { %12 = sbr.rel (!%p10_p6) target bundleno = 1 (0x1), region = 62 }
  0xfd   :  { %658 = vsyncpa [#allocation3], 1 }
  0xfe   :  { %660 = vsyncpa [#allocation3 + $0x1], 1 }

</bundles_post_ra>
